<compile_context>
chip_gen: v7x
topology: tpu7x:2x2x1
jax: 0.10.0
libtpu: 0.0.40
codegen_flags: <defaults>
</compile_context>

<pallas_src>
import numpy as np

import jax
import jax.numpy as jnp
from jax.experimental import pallas as pl
from jax.experimental.pallas import tpu as pltpu


def _round_up(x: int, m: int) -> int:
    return ((x + m - 1) // m) * m


def _cdiv(a: int, b: int) -> int:
    return (a + b - 1) // b


def _chip_defaults():
    """Per-generation tile / VMEM defaults (review-derived rooflines)."""
    kind = ""
    try:
        kind = jax.devices()[0].device_kind.lower()
    except Exception:  # pragma: no cover - CPU fallback while tracing offline
        pass
    if "v5" in kind:   # v5e: 197 TF/s bf16, ~0.82 TB/s; larger tk eases vst slot
        return dict(tm=512, tn=512, tk=1024, vmem=32 * 1024 * 1024, two_tc=False)
    if "v6" in kind:   # v6e: most bandwidth-starved -> biggest output tiles
        return dict(tm=1024, tn=1024, tk=512, vmem=64 * 1024 * 1024, two_tc=False)
    if "7" in kind:    # v7x: 64 MiB VMEM per TC, 2 TCs/chip
        return dict(tm=768, tn=768, tk=512, vmem=48 * 1024 * 1024, two_tc=True)
    return dict(tm=512, tn=512, tk=512, vmem=48 * 1024 * 1024, two_tc=False)


# ------------------------------------------------------------------
# Kernel
# ------------------------------------------------------------------
def _linear_matmul_kernel(x_ref, w_ref, o_ref, acc_ref):
    """One (tm, tn) output tile.  K reduction runs along grid axis 2 (last).

    x_ref: (tm, tk), w_ref: (tn, tk) in PyTorch (N, K) layout; contraction on
    the shared K (last) dim computes x @ W.T without any HBM transpose.
    """
    @pl.when(pl.program_id(2) == 0)
    def _():
        acc_ref[...] = jnp.zeros_like(acc_ref)

    acc_ref[...] += jax.lax.dot_general(
        x_ref[...],
        w_ref[...],
        dimension_numbers=(((1,), (1,)), ((), ())),   # contract K with K
        preferred_element_type=jnp.float32,
    )

    @pl.when(pl.program_id(2) == pl.num_programs(2) - 1)
    def _():
        o_ref[...] = acc_ref[...].astype(o_ref.dtype)


# ------------------------------------------------------------------
# Wrapper
# ------------------------------------------------------------------
def linear_forward(x, weight, *, compute_dtype=jnp.bfloat16,
                   tm=None, tn=None, tk=None, vmem_limit_bytes=None):
    """Pallas equivalent of torch `Linear.forward`: y = x @ weight.T.

    x:       (..., in_features)
    weight:  (out_features, in_features)   -- PyTorch layout, NOT transposed
    compute_dtype: MXU operand dtype (default bf16 fast path, f32 accumulate).
                   Pass None for exact f32-operand module numerics.
                   (astype is a no-op if inputs already carry this dtype, so
                   store the weight in compute_dtype to keep the hot path free
                   of extra HBM passes.)
    returns: (..., out_features), dtype of x.
    """
    leading = x.shape[:-1]
    K = x.shape[-1]
    N, K_w = weight.shape
    assert K == K_w, f"in_features mismatch: {K} vs {K_w}"
    M = int(np.prod(leading)) if leading else 1
    out_dtype = x.dtype

    cfg = _chip_defaults()
    tm = cfg["tm"] if tm is None else tm
    tn = cfg["tn"] if tn is None else tn
    tk = cfg["tk"] if tk is None else tk
    vmem_limit_bytes = cfg["vmem"] if vmem_limit_bytes is None else vmem_limit_bytes

    x2 = x.reshape(M, K)
    w = weight  # keep (N, K); the kernel contracts on the last dim of both.

    if compute_dtype is not None:
        x2 = x2.astype(compute_dtype)   # no-op if already compute_dtype
        w = w.astype(compute_dtype)

    # Tile clamping: lane dim multiple of 128; sublane multiple of 16 for bf16
    # (2 rows packed per sublane) and 8 for f32.  Tiny problems collapse to a
    # single full block.
    sublane = 16 if x2.dtype == jnp.bfloat16 else 8
    tm = min(tm, _round_up(M, sublane))
    tk = min(tk, _round_up(K, 128))
    tn = min(tn, _round_up(N, 128))

    # v7x megacore: with a single M block make sure the "parallel" N axis has
    # at least 2 blocks so both TensorCores get work.
    if cfg["two_tc"] and _cdiv(M, tm) == 1:
        while _cdiv(N, tn) < 2 and tn > 256:
            tn = max(256, _round_up(tn // 2, 128))

    # Zero-pad ONLY the reduction (K) axis when ragged -- required so padded
    # lanes contribute zeros.  Ragged M/N edges are handled by the cdiv grid
    # plus Pallas boundary masking (no extra HBM copies in the aligned case).
    Kp = _round_up(K, tk)
    if Kp != K:
        x2 = jnp.pad(x2, ((0, 0), (0, Kp - K)))
        w = jnp.pad(w, ((0, 0), (0, Kp - K)))

    grid = (_cdiv(M, tm), _cdiv(N, tn), Kp // tk)

    cost = pl.CostEstimate(
        flops=2 * M * N * K,
        transcendentals=0,
        bytes_accessed=(x2.size * x2.dtype.itemsize
                        + w.size * w.dtype.itemsize
                        + M * N * jnp.dtype(out_dtype).itemsize),
    )

    out = pl.pallas_call(
        _linear_matmul_kernel,
        out_shape=jax.ShapeDtypeStruct((M, N), out_dtype),
        grid_spec=pltpu.PrefetchScalarGridSpec(
            num_scalar_prefetch=0,
            grid=grid,
            in_specs=[
                pl.BlockSpec((tm, tk), lambda i, j, k: (i, k)),  # x tile (M, K)
                pl.BlockSpec((tn, tk), lambda i, j, k: (j, k)),  # W tile (N, K)
            ],
            out_specs=pl.BlockSpec((tm, tn), lambda i, j, k: (i, j)),
            scratch_shapes=[pltpu.VMEM((tm, tn), jnp.float32)],  # f32 accumulator
        ),
        compiler_params=pltpu.CompilerParams(
            # K reduction last + arbitrary (accumulator resident); M/N parallel.
            dimension_semantics=("parallel", "parallel", "arbitrary"),
            vmem_limit_bytes=vmem_limit_bytes,
        ),
        cost_estimate=cost,
    )(x2, w)

    return out.reshape(*leading, N)


# ------------------------------------------------------------------
# Main
# ------------------------------------------------------------------
if __name__ == "__main__":
    in_features, out_features = 32, 64
    batch, seq = 2, 8

    key = jax.random.PRNGKey(0)
    k_w, k_x = jax.random.split(key)

    # Same init as the PyTorch module: trunc_normal(std=sqrt(2/(in+out)), +/-3*std)
    std = float(np.sqrt(2.0 / (in_features + out_features)))
    weight_f32 = (std * jax.random.truncated_normal(
        k_w, -3.0, 3.0, (out_features, in_features))).astype(jnp.float32)
    x = jax.random.normal(k_x, (batch, seq, in_features), dtype=jnp.float32)

    # float64 host reference.
    ref = np.asarray(x, np.float64) @ np.asarray(weight_f32, np.float64).T

    # Default fast path: bf16 operands on the MXU, f32 accumulation.  The
    # weight is pre-cast ONCE (simulating a parameter cached in the compute
    # dtype) so the wrapper's astype on the weight is a no-op per call.
    weight_bf16 = weight_f32.astype(jnp.bfloat16)
    y = linear_forward(x, weight_bf16)
    jax.block_until_ready(y)
    assert y.shape == (batch, seq, out_features)
    np.testing.assert_allclose(np.asarray(y, np.float64), ref, rtol=5e-2, atol=5e-2)

    # Opt-in numerics mode: f32 operands, exact PyTorch-module semantics.
    y_f32 = linear_forward(x, weight_f32, compute_dtype=None)
    jax.block_until_ready(y_f32)
    assert y_f32.shape == (batch, seq, out_features)
    np.testing.assert_allclose(np.asarray(y_f32, np.float64), ref, rtol=1e-2, atol=1e-2)

    print("KERNEL_OK")
</pallas_src>

<mosaic_0001>
module attributes {stable_mosaic.version = 11 : i64} {
  func.func @_linear_matmul_kernel(%arg0: i32, %arg1: i32, %arg2: i32, %arg3: memref<16x128xbf16, #tpu.memory_space<vmem>>, %arg4: memref<128x128xbf16, #tpu.memory_space<vmem>>, %arg5: memref<16x128xf32, #tpu.memory_space<vmem>>, %arg6: memref<16x128xf32, #tpu.memory_space<vmem>>) attributes {dimension_semantics = [#tpu.dimension_semantics<parallel>, #tpu.dimension_semantics<parallel>, #tpu.dimension_semantics<arbitrary>], iteration_bounds = array<i64: 1, 1, 1>, scalar_prefetch = 0 : i64, scratch_operands = 1 : i64, tpu.core_type = #tpu.core_type<tc>, window_params = [{transform_indices = @transform_0, window_bounds = array<i64: 16, 128>}, {transform_indices = @transform_1, window_bounds = array<i64: 128, 128>}, {transform_indices = @transform_2, window_bounds = array<i64: 16, 128>}]} {
    %c0_i32 = arith.constant 0 : i32
    %0 = arith.cmpi eq, %arg2, %c0_i32 : i32
    %1 = arith.extui %0 : i1 to i32
    %c0_i32_0 = arith.constant 0 : i32
    %2 = arith.cmpi ne, %1, %c0_i32_0 : i32
    scf.if %2 {
      %cst_10 = arith.constant 0.000000e+00 : f32
      %12 = vector.broadcast %cst_10 : f32 to vector<16x128xf32>
      %c0_11 = arith.constant 0 : index
      %c0_12 = arith.constant 0 : index
      %13 = vector.load %arg6[%c0_11, %c0_12] : memref<16x128xf32, #tpu.memory_space<vmem>>, vector<16x128xf32>
      tpu.vector_store %arg6[%c0_11, %c0_12], %12 {strides = array<i32>} : memref<16x128xf32, #tpu.memory_space<vmem>>, vector<16x128xf32>,
    } else {
    }
    %c0 = arith.constant 0 : index
    %c0_1 = arith.constant 0 : index
    %3 = vector.load %arg6[%c0, %c0_1] : memref<16x128xf32, #tpu.memory_space<vmem>>, vector<16x128xf32>
    %c0_2 = arith.constant 0 : index
    %c0_3 = arith.constant 0 : index
    %4 = vector.load %arg3[%c0_2, %c0_3] : memref<16x128xbf16, #tpu.memory_space<vmem>>, vector<16x128xbf16>
    %c0_4 = arith.constant 0 : index
    %c0_5 = arith.constant 0 : index
    %5 = vector.load %arg4[%c0_4, %c0_5] : memref<128x128xbf16, #tpu.memory_space<vmem>>, vector<128x128xbf16>
    %cst = arith.constant dense<0.000000e+00> : vector<16x128xf32>
    %6 = tpu.matmul %4, %5, %cst {dimension_numbers = #tpu.dot_dimension_numbers<[1], [1], [0], [0], [0, 0, 1, 0], [], []>} : vector<16x128xbf16>, vector<128x128xbf16>, vector<16x128xf32> -> vector<16x128xf32>
    %7 = arith.addf %3, %6 : vector<16x128xf32>
    %c0_6 = arith.constant 0 : index
    %c0_7 = arith.constant 0 : index
    %8 = vector.load %arg6[%c0_6, %c0_7] : memref<16x128xf32, #tpu.memory_space<vmem>>, vector<16x128xf32>
    tpu.vector_store %arg6[%c0_6, %c0_7], %7 {strides = array<i32>} : memref<16x128xf32, #tpu.memory_space<vmem>>, vector<16x128xf32>,
    %c0_i32_8 = arith.constant 0 : i32
    %9 = arith.cmpi eq, %arg2, %c0_i32_8 : i32
    %10 = arith.extui %9 : i1 to i32
    %c0_i32_9 = arith.constant 0 : i32
    %11 = arith.cmpi ne, %10, %c0_i32_9 : i32
    scf.if %11 {
      %c0_10 = arith.constant 0 : index
      %c0_11 = arith.constant 0 : index
      %12 = vector.load %arg6[%c0_10, %c0_11] : memref<16x128xf32, #tpu.memory_space<vmem>>, vector<16x128xf32>
      %c0_12 = arith.constant 0 : index
      %c0_13 = arith.constant 0 : index
      %13 = vector.load %arg5[%c0_12, %c0_13] : memref<16x128xf32, #tpu.memory_space<vmem>>, vector<16x128xf32>
      tpu.vector_store %arg5[%c0_12, %c0_13], %12 {strides = array<i32>} : memref<16x128xf32, #tpu.memory_space<vmem>>, vector<16x128xf32>,
    } else {
    }
    return
  }
  func.func @transform_0(%arg0: i32, %arg1: i32, %arg2: i32) -> (i32, i32) {
    %c0_i32 = arith.constant 0 : i32
    return %arg0, %arg2 : i32, i32
  }
  func.func @transform_1(%arg0: i32, %arg1: i32, %arg2: i32) -> (i32, i32) {
    %c0_i32 = arith.constant 0 : i32
    return %arg1, %arg2 : i32, i32
  }
  func.func @transform_2(%arg0: i32, %arg1: i32, %arg2: i32) -> (i32, i32) {
    %c0_i32 = arith.constant 0 : i32
    return %arg0, %arg1 : i32, i32
  }
}

</mosaic_0001>

<bundles_post_ra>
// kernel: tpu_custom_call.1
= control target key start
LH: loop header
LB: loop body
LE: loop exit
PB: predicated region body
PF: predicated region fallthrough
CT: control target
= control target key end

     0   :  { %7 = vsyncpa [#allocation4], 0  ;;  %s379_s0 = inlined_call_operand.hbm [shape: bf16[16,128], index: 0, kind: input, shape index: {}]   ;;  %s380_s1 = inlined_call_operand.hbm [shape: bf16[64,128], index: 1, kind: input, shape index: {}]   ;;  %s381_s2 = inlined_call_operand.hbm [shape: f32[16,64], index: 2, kind: output, shape index: {}]  }
   0x1   :  { %8 = vsyncpa [#allocation7], 0 }
   0x2   :  { %9 = vsyncpa [#allocation5], 0  ;;  %s319_s9 = smov [#allocation3]   ;;  %s247_s13 = scalar_lea.hbm %s379_s0, 128 }
   0x3   :  { %s15_s10 = sshll.u32 %s319_s9, 4  ;;  %p248_p0 = scmp.ne.s32.totalorder %s379_s0, %s247_s13  ;;  %s16_s10 = int_to_ptr.vmem [resolvable:$true] %s15_s10 }
   0x4   :  { %p251_p1 = scmp.lt.u32.totalorder %s247_s13, %s379_s0 }
   0x6   :  { %p253_p2 = pnand %p251_p1, %p248_p0 }
   0x8   :  { %256 = shalt.err (!%p253_p2)
}
   0x9   :  { %s257_s18 = scalar_lea.vmem %s16_s10, 128  ;;  %p262_p4 = scmp.lt.s32.totalorder %s16_s10, %s16_s10 }
   0xa   :  { %p258_p3 = scmp.ne.s32.totalorder %s16_s10, %s257_s18  ;;  %p263_p5 = scmp.lt.s32.totalorder %s257_s18, %s257_s18 }
   0xc   :  { %p264_p6 = por %p263_p5, %p262_p4 }
   0xe   :  { %p265_p7 = pnand %p264_p6, %p258_p3 }
  0x10   :  { %268 = shalt.err (!%p265_p7)
}
  0x11   :  { %s320_s19 = smov 64   ;;  %s321_s20 = smov 4  }
  0x12   :  { %21 = dma.hbm_to_vmem [thread:$0]  %s379_s0, 128, %s16_s10, [#allocation4], %s320_s19, %s320_s19, %s321_s20  }
  0x13   :  { %26 = vsyncadd [#allocation7], 512  ;;  %s322_s23 = smov [#allocation6]   ;;  %s269_s27 = scalar_lea.hbm %s380_s1, 512 }
  0x14   :  { %s27_s24 = sshll.u32 %s322_s23, 4  ;;  %p270_p8 = scmp.ne.s32.totalorder %s380_s1, %s269_s27  ;;  %s28_s24 = int_to_ptr.vmem [resolvable:$true] %s27_s24 }
  0x15   :  { %p273_p9 = scmp.lt.u32.totalorder %s269_s27, %s380_s1 }
  0x17   :  { %p275_p10 = pnand %p273_p9, %p270_p8 }
  0x19   :  { %278 = shalt.err (!%p275_p10)
}
  0x1a   :  { %s279_s4 = scalar_lea.vmem %s28_s24, 512  ;;  %s283_s0 = scalar_lea.vmem %s28_s24, 1024 }
  0x1b   :  { %p280_p11 = scmp.ne.s32.totalorder %s28_s24, %s279_s4  ;;  %p284_p12 = scmp.lt.s32.totalorder %s28_s24, %s28_s24 }
  0x1c   :  { %p285_p13 = scmp.lt.s32.totalorder %s283_s0, %s279_s4 }
  0x1e   :  { %p286_p0 = por %p285_p13, %p284_p12 }
  0x20   :  { %p287_p1 = pnand %p286_p0, %p280_p11 }
  0x22   :  { %290 = shalt.err (!%p287_p1)
}
  0x23   :  { %33 = dma.hbm_to_vmem [thread:$0]  %s380_s1, 512, %s28_s24, [#allocation7], %s320_s19, %s320_s19, %s321_s20  }
  0x24   :  { %313 = dma.done.wait [#allocation4], 128  }
  0x25   :  { %314 = vsyncadd [#allocation4], 4294967168 }
  0x26   :  { %315 = dma.done.wait [#allocation7], 1024  }
  0x27   :  { %316 = vsyncadd [#allocation7], 4294966272  ;;  %v323_v0 = vmov 0.0   ;;  %vm324_vm0 = vmmov 0   ;;  %v238_v1 = vld [vmem:[#allocation6] sm:$0xff]   ;;  %v239_v2 = vld [vmem:[#allocation6 + $0x8] sm:$0xff]  }
  0x28   :  { %209 = vmatprep.subr.bf16.mxu0 %v323_v0  ;;  %225 = vmatprep.mubr.msk.bf16.mxu0 %vm324_vm0, %v323_v0  ;;  %v240_v3 = vld [vmem:[#allocation6 + $0x10] sm:$0xff]   ;;  %v241_v4 = vld [vmem:[#allocation6 + $0x18] sm:$0xff]   ;;  %v242_v5 = vld [vmem:[#allocation6 + $0x20] sm:$0xff]   ;;  %s325_s1 = smov [#allocation8]  }
  0x29   :  { %210 = vmatpush3.bf16.xpose.msra.mxu0 %v238_v1  ;;  %v243_v6 = vld [vmem:[#allocation6 + $0x28] sm:$0xff]   ;;  %v244_v7 = vld [vmem:[#allocation6 + $0x30] sm:$0xff]   ;;  %v245_v8 = vld [vmem:[#allocation6 + $0x38] sm:$0xff]   ;;  %s178_s7 = sshll.u32 %s325_s1, 4  ;;  %s179_s7 = int_to_ptr.vmem [resolvable:$true] %s178_s7 }
  0x2a   :  { %211 = vmatprep.subr.bf16.mxu0 %v323_v0  ;;  %v246_v9 = vld [vmem:[#allocation3] sm:$0xff]   ;;  %s291_s8 = scalar_lea.vmem %s179_s7, 256  ;;  %p296_p3 = scmp.lt.s32.totalorder %s179_s7, %s179_s7 }
  0x2b   :  { %p292_p2 = scmp.ne.s32.totalorder %s179_s7, %s291_s8  ;;  %p297_p4 = scmp.lt.s32.totalorder %s291_s8, %s291_s8 }
  0x2d   :  { %p298_p5 = por %p297_p4, %p296_p3 }
  0x2f   :  { %p299_p6 = pnand %p298_p5, %p292_p2 }
  0x31   :  { %212 = vmatpush3.bf16.xpose.msra.mxu0 %v239_v2 }
  0x32   :  { %213 = vmatprep.subr.bf16.mxu0 %v323_v0 }
  0x39   :  { %214 = vmatpush3.bf16.xpose.msra.mxu0 %v240_v3 }
  0x3a   :  { %215 = vmatprep.subr.bf16.mxu0 %v323_v0 }
  0x41   :  { %216 = vmatpush3.bf16.xpose.msra.mxu0 %v241_v4 }
  0x42   :  { %217 = vmatprep.subr.bf16.mxu0 %v323_v0 }
  0x49   :  { %218 = vmatpush3.bf16.xpose.msra.mxu0 %v242_v5 }
  0x4a   :  { %219 = vmatprep.subr.bf16.mxu0 %v323_v0 }
  0x51   :  { %220 = vmatpush3.bf16.xpose.msra.mxu0 %v243_v6 }
  0x52   :  { %221 = vmatprep.subr.bf16.mxu0 %v323_v0 }
  0x59   :  { %222 = vmatpush3.bf16.xpose.msra.mxu0 %v244_v7 }
  0x5a   :  { %223 = vmatprep.subr.bf16.mxu0 %v323_v0 }
  0x61   :  { %224 = vmatpush3.bf16.xpose.msra.mxu0 %v245_v8 }
  0x68   :  { %226 = vmatmul.mubr.bf16.vlgmr.msra.gmra.mrb[0].mxu0 %v246_v9 }
 0x13b   :  { %v155_v10 = vpop.f32.mrb[0].mxu0 }
 0x13c   :  { %171 = vst [vmem:[#allocation8] sm:$0xff] %v155_v10  ;;  %v227_v11 = vpop.f32.mrb[1].mxu0 }
 0x13d   :  { %v158_v12 = vpop.f32.mrb[2].mxu0 }
 0x13e   :  { %172 = vst [vmem:[#allocation8 + $0x8] sm:$0xff] %v158_v12  ;;  %v228_v13 = vpop.f32.mrb[3].mxu0 }
 0x13f   :  { %302 = shalt.err (!%p299_p6)
}
 0x140   :  { %s303_s11 = scalar_lea.hbm %s381_s2, 256 }
 0x141   :  { %p304_p7 = scmp.ne.s32.totalorder %s381_s2, %s303_s11  ;;  %p307_p8 = scmp.lt.u32.totalorder %s303_s11, %s381_s2 }
 0x143   :  { %p309_p9 = pnand %p307_p8, %p304_p7 }
 0x145   :  { %312 = shalt.err (!%p309_p9)
}
 0x146   :  { %s326_s16 = smov 128   ;;  %s327_s17 = smov 8  }
 0x147   :  { %184 = dma.vmem_to_hbm [thread:$0]  %s179_s7, 256, %s381_s2, [#allocation5], %s326_s16, %s326_s16, %s327_s17  }
 0x148   :  { %317 = dma.done.wait [#allocation5], 256  }
 0x149   :  { %318 = vsyncadd [#allocation5], 4294967040 }
 0x14a   :  { %188 = vsyncpa [#allocation4], 1 }
 0x14b   :  { %189 = vsyncpa [#allocation7], 1 }
 0x14c   :  { %190 = vsyncpa [#allocation5], 1 }

</bundles_post_ra>
